<compile_context>
chip_gen: v7x
topology: tpu7x:2x2x1
jax: 0.10.0
libtpu: 0.0.40
codegen_flags: <defaults>
</compile_context>

<pallas_src>
import jax
import jax.numpy as jnp
from jax import lax
from jax.experimental import pallas as pl
from jax.experimental.pallas import tpu as pltpu


_CONTRACT_00 = (((0,), (0,)), ((), ()))  # contract axis 0 of both operands (A^T @ B)
_CONTRACT_10 = (((1,), (0,)), ((), ()))  # standard matmul (A @ B)


def _rbf(col, row, scale):
    """Gaussian weights between a column (N,1) and a row (1,M) of coordinates.

    Matches pw_dists2 (a^2 + b^2 - 2ab, inner dim 1) followed by
    exp(scale * d2) with scale = -0.5 / ls**2 precomputed in the wrapper.
    """
    d2 = col * col + row * row - 2.0 * (col * row)           # (N, M)
    return jnp.exp(d2 * scale)


# --------------------------------------------------------------------------
# Kernels (one batch element per grid step)
# --------------------------------------------------------------------------
def _on_to_on_kernel(scale_ref, xin_lon_ref, xin_lat_ref, xout_lon_ref,
                     xout_lat_ref, wt_ref, o_ref):
    scale = scale_ref[...]                                   # (1, 1)
    ws0 = _rbf(xin_lon_ref[...], xout_lon_ref[...], scale)   # (W, X)
    ws1 = _rbf(xin_lat_ref[...], xout_lat_ref[...], scale)   # (H, Y)

    H = xin_lat_ref.shape[0]
    X = xout_lon_ref.shape[1]
    Y = xout_lat_ref.shape[1]
    C1 = wt_ref.shape[1] // H                                # C + 1

    # fused over channels: (W,(C+1)H)^T (W,X) -> ((C+1)H, X)
    t = lax.dot_general(wt_ref[...], ws0, _CONTRACT_00,
                        preferred_element_type=jnp.float32)
    # relayout ((C+1)H, X) -> ((C+1)X, H): leading split / minor-2D transpose /
    # leading merge (all reshapes keep the minormost dim).
    t = jnp.swapaxes(t.reshape(C1, H, X), 1, 2).reshape(C1 * X, H)
    # ((C+1)X, H) @ (H, Y) -> ((C+1)X, Y)
    ee = lax.dot_general(t, ws1, _CONTRACT_10,
                         preferred_element_type=jnp.float32)

    dens = ee[:X, :]                                         # (X, Y)
    inv = pl.reciprocal(jnp.clip(dens, 1e-6, 1e5))           # hoisted, once
    vals = (ee[X:, :].reshape(C1 - 1, X, Y) * inv[None]).reshape((C1 - 1) * X, Y)
    o_ref[pl.ds(0, X), :] = dens
    o_ref[pl.ds(X, (C1 - 1) * X), :] = vals


def _off_to_on_kernel(scale_ref, xin_lon_ref, xin_lat_ref, xout_lon_ref,
                      xout_lat_ref, wt_ref, o_ref):
    scale = scale_ref[...]                                   # (1, 1)
    lon = xin_lon_ref[...]                                   # (1, W) row
    lat = xin_lat_ref[...]                                   # (W, 1) col
    lon_m = jnp.logical_not(jnp.isnan(lon))
    lat_m = jnp.logical_not(jnp.isnan(lat))
    lon_z = jnp.where(lon_m, lon, 0.0)
    lat_z = jnp.where(lat_m, lat, 0.0)

    # ws0t[x, w] = k(lon[w], xout_lon[x]) * lon_mask[w]
    ws0t = _rbf(xout_lon_ref[...], lon_z, scale) * lon_m.astype(jnp.float32)  # (X, W)
    # ws1[w, y] = k(lat[w], xout_lat[y]) * lat_mask[w]
    ws1 = _rbf(lat_z, xout_lat_ref[...], scale) * lat_m.astype(jnp.float32)   # (W, Y)

    wt = wt_ref[...]                                         # (C+1, W), NaN-clean
    C1, W = wt.shape
    X = ws0t.shape[0]
    Y = ws1.shape[1]

    # rank-1 inject of the channel values into ws0, then one fused matmul:
    a = (wt[:, None, :] * ws0t[None, :, :]).reshape(C1 * X, W)    # ((C+1)X, W)
    ee = lax.dot_general(a, ws1, _CONTRACT_10,
                         preferred_element_type=jnp.float32)      # ((C+1)X, Y)

    dens = ee[:X, :]
    inv = pl.reciprocal(jnp.clip(dens, 1e-6, 1e5))
    vals = (ee[X:, :].reshape(C1 - 1, X, Y) * inv[None]).reshape((C1 - 1) * X, Y)
    o_ref[pl.ds(0, X), :] = dens
    o_ref[pl.ds(X, (C1 - 1) * X), :] = vals


def _on_to_off_kernel(scale_ref, xin_lon_ref, xin_lat_ref, xout_lon_ref,
                      xout_lat_ref, wt_ref, o_ref):
    scale = scale_ref[...]                                   # (1, 1)
    xo_lon = xout_lon_ref[...]                               # (1, X)
    xo_lat = xout_lat_ref[...]                               # (1, X)
    lon_m = jnp.logical_not(jnp.isnan(xo_lon))
    lat_m = jnp.logical_not(jnp.isnan(xo_lat))
    xo_lon_z = jnp.where(lon_m, xo_lon, 0.0)
    xo_lat_z = jnp.where(lat_m, xo_lat, 0.0)

    ws0 = _rbf(xin_lon_ref[...], xo_lon_z, scale) * lon_m.astype(jnp.float32)  # (W, X)
    ws1 = _rbf(xin_lat_ref[...], xo_lat_z, scale) * lat_m.astype(jnp.float32)  # (H, X)

    H = xin_lat_ref.shape[0]
    X = xo_lon.shape[1]
    C1 = wt_ref.shape[1] // H                                # C + 1

    # fused over channels: (W,(C+1)H)^T (W,X) -> ((C+1)H, X)
    t = lax.dot_general(wt_ref[...], ws0, _CONTRACT_00,
                        preferred_element_type=jnp.float32)
    # sum over H with ws1 aligned on the output points -> (C+1, X)
    ee = jnp.sum(t.reshape(C1, H, X) * ws1[None], axis=1)

    dens = ee[0:1, :]                                        # (1, X)
    inv = pl.reciprocal(jnp.clip(dens, 1e-6, 1e5))
    rows = lax.broadcasted_iota(jnp.int32, ee.shape, 0)
    o_ref[...] = jnp.where(rows == 0, ee, ee * inv)          # single slab store


# --------------------------------------------------------------------------
# Wrapper (layout plumbing + pallas_call setup)
# --------------------------------------------------------------------------
def _augment_channels(wt):
    """Prepend the 0/1 density channel and zero the NaNs (torch: cat + nan->0)."""
    dens = jnp.where(jnp.isnan(wt[:, 0:1]), 0.0, 1.0).astype(wt.dtype)
    return jnp.concatenate([dens, jnp.where(jnp.isnan(wt), 0.0, wt)], axis=1)


def conv_deep_set_forward(x_in, wt, x_out, init_ls, mode, density_channel=True):
    f32 = jnp.float32
    ls = jnp.asarray(init_ls, f32).reshape(())
    # precompute -0.5 / ls**2 once (removes per-element divide inside the kernel)
    scale = (-0.5 / (ls * ls)).reshape(1, 1)
    B = wt.shape[0]

    scale_spec = pl.BlockSpec((1, 1), lambda b: (0, 0))

    def spec3(n1, n2):
        return pl.BlockSpec((None, n1, n2), lambda b: (b, 0, 0))

    if mode == 'OnToOn':
        _, C, W, H = wt.shape
        X, Y = x_out[0].shape[1], x_out[1].shape[1]
        wt_aug = _augment_channels(wt.astype(f32))                        # (B,C+1,W,H)
        wt_pack = jnp.transpose(wt_aug, (0, 2, 1, 3)).reshape(B, W, (C + 1) * H)
        inputs = (scale,
                  x_in[0].astype(f32)[:, :, None],    # (B, W, 1)
                  x_in[1].astype(f32)[:, :, None],    # (B, H, 1)
                  x_out[0].astype(f32)[:, None, :],   # (B, 1, X)
                  x_out[1].astype(f32)[:, None, :],   # (B, 1, Y)
                  wt_pack)                            # (B, W, (C+1)H)
        in_specs = [scale_spec, spec3(W, 1), spec3(H, 1), spec3(1, X), spec3(1, Y),
                    spec3(W, (C + 1) * H)]
        out_specs = pl.BlockSpec((None, (C + 1) * X, Y), lambda b: (b, 0, 0))
        out_shape = jax.ShapeDtypeStruct((B, (C + 1) * X, Y), f32)
        kernel = _on_to_on_kernel
        reshape_out = lambda e: e.reshape(B, C + 1, X, Y)
    elif mode == 'OffToOn':
        _, C, W = wt.shape
        X, Y = x_out[0].shape[1], x_out[1].shape[1]
        wt_aug = _augment_channels(wt.astype(f32))           # (B, C+1, W)
        inputs = (scale,
                  x_in[0].astype(f32)[:, None, :],    # (B, 1, W)  lon row
                  x_in[1].astype(f32)[:, :, None],    # (B, W, 1)  lat col
                  x_out[0].astype(f32)[:, :, None],   # (B, X, 1)  lon col
                  x_out[1].astype(f32)[:, None, :],   # (B, 1, Y)  lat row
                  wt_aug)
        in_specs = [scale_spec, spec3(1, W), spec3(W, 1), spec3(X, 1), spec3(1, Y),
                    spec3(C + 1, W)]
        out_specs = pl.BlockSpec((None, (C + 1) * X, Y), lambda b: (b, 0, 0))
        out_shape = jax.ShapeDtypeStruct((B, (C + 1) * X, Y), f32)
        kernel = _off_to_on_kernel
        reshape_out = lambda e: e.reshape(B, C + 1, X, Y)
    elif mode == 'OnToOff':
        _, C, W, H = wt.shape
        X = x_out[0].shape[1]
        wt_aug = _augment_channels(wt.astype(f32))                        # (B,C+1,W,H)
        wt_pack = jnp.transpose(wt_aug, (0, 2, 1, 3)).reshape(B, W, (C + 1) * H)
        inputs = (scale,
                  x_in[0].astype(f32)[:, :, None],    # (B, W, 1)
                  x_in[1].astype(f32)[:, :, None],    # (B, H, 1)
                  x_out[0].astype(f32)[:, None, :],   # (B, 1, X)
                  x_out[1].astype(f32)[:, None, :],   # (B, 1, X)
                  wt_pack)                            # (B, W, (C+1)H)
        in_specs = [scale_spec, spec3(W, 1), spec3(H, 1), spec3(1, X), spec3(1, X),
                    spec3(W, (C + 1) * H)]
        out_specs = pl.BlockSpec((None, C + 1, X), lambda b: (b, 0, 0))
        out_shape = jax.ShapeDtypeStruct((B, C + 1, X), f32)
        kernel = _on_to_off_kernel
        reshape_out = lambda e: e
    else:
        raise ValueError(f'unknown mode: {mode}')

    grid_spec = pltpu.PrefetchScalarGridSpec(
        num_scalar_prefetch=0, grid=(B,),
        in_specs=in_specs, out_specs=out_specs)

    ee = pl.pallas_call(
        kernel, out_shape=out_shape, grid_spec=grid_spec,
        compiler_params=pltpu.CompilerParams(
            dimension_semantics=("parallel",)))(*inputs)
    ee = reshape_out(ee)

    if density_channel:
        return ee
    return ee[:, 1:]


# --------------------------------------------------------------------------
# Pure-JAX reference (mirrors the PyTorch forward) for verification
# --------------------------------------------------------------------------
def ref_forward(x_in, wt, x_out, init_ls, mode, density_channel=True):
    hp = lax.Precision.HIGHEST
    dens_ch = jnp.where(jnp.isnan(wt[:, 0:1, ...]), 0.0, 1.0)
    wt_p = jnp.concatenate([dens_ch, wt], axis=1)
    wt_p = jnp.where(jnp.isnan(wt_p), 0.0, wt_p)
    ls2 = init_ls.reshape(())**2

    def cw(x1, x2):
        a = x1[..., None]
        b = x2[..., None]
        na = jnp.sum(a ** 2, -1)[..., :, None]
        nb = jnp.sum(b ** 2, -1)[..., None, :]
        d2 = na + nb - 2 * jnp.matmul(a, jnp.swapaxes(b, -1, -2), precision=hp)
        return jnp.exp(-0.5 * d2 / ls2)

    if mode == 'OffToOn':
        m0 = ~jnp.isnan(x_in[0])
        m1 = ~jnp.isnan(x_in[1])
        xi0 = jnp.where(m0, x_in[0], 0.0)
        xi1 = jnp.where(m1, x_in[1], 0.0)
        ws0 = cw(xi0, x_out[0]) * m0[..., None]
        ws1 = cw(xi1, x_out[1]) * m1[..., None]
        ee = jnp.einsum('bcw,bwx,bwy->bcxy', wt_p, ws0, ws1, precision=hp)
    elif mode == 'OnToOn':
        ws0 = cw(x_in[0], x_out[0])
        ws1 = cw(x_in[1], x_out[1])
        ee = jnp.einsum('bcwh,bwx,bhy->bcxy', wt_p, ws0, ws1, precision=hp)
    elif mode == 'OnToOff':
        m0 = ~jnp.isnan(x_out[0])
        m1 = ~jnp.isnan(x_out[1])
        xo0 = jnp.where(m0, x_out[0], 0.0)
        xo1 = jnp.where(m1, x_out[1], 0.0)
        ws0 = cw(x_in[0], xo0) * m0[..., None, :]
        ws1 = cw(x_in[1], xo1) * m1[..., None, :]
        ee = jnp.einsum('bcwh,bwx,bhx->bcx', wt_p, ws0, ws1, precision=hp)
    else:
        raise ValueError(mode)

    dens = ee[:, 0:1]
    vals = ee[:, 1:]
    norm = vals / jnp.clip(dens, 1e-6, 1e5)
    if density_channel:
        return jnp.concatenate([dens, norm], axis=1)
    return norm


# --------------------------------------------------------------------------
# Demo / test
# --------------------------------------------------------------------------
if __name__ == "__main__":
    key = jax.random.PRNGKey(0)
    B, C = 2, 4
    W = H = 16          # input grid size
    X = Y = 16          # output grid size
    P = 24              # number of off-grid observation points

    # deterministic "learned" length-scale parameter (shape (1,), as in torch)
    init_ls = jnp.array([0.3], jnp.float32)

    ks = jax.random.split(key, 16)

    def grid_coords(n, k, jitter=0.0):
        base = jnp.broadcast_to(jnp.linspace(-1.0, 1.0, n)[None, :], (B, n))
        return base + jitter * jax.random.normal(k, (B, n), jnp.float32)

    results_ok = True

    # ---------------- OnToOn ----------------
    x_in = [grid_coords(W, ks[0], 0.01), grid_coords(H, ks[1], 0.01)]
    x_out = [grid_coords(X, ks[2]), grid_coords(Y, ks[3])]
    wt = jax.random.normal(ks[4], (B, C, W, H), jnp.float32)
    wt = jnp.where(jax.random.bernoulli(ks[5], 0.1, (B, C, W, H)), jnp.nan, wt)
    out = jax.block_until_ready(
        conv_deep_set_forward(x_in, wt, x_out, init_ls, 'OnToOn'))
    ref = ref_forward(x_in, wt, x_out, init_ls, 'OnToOn')
    results_ok &= bool(jnp.allclose(out, ref, atol=1e-3, rtol=1e-3))

    # density_channel=False path
    out_nd = jax.block_until_ready(
        conv_deep_set_forward(x_in, wt, x_out, init_ls, 'OnToOn',
                              density_channel=False))
    ref_nd = ref_forward(x_in, wt, x_out, init_ls, 'OnToOn',
                         density_channel=False)
    results_ok &= bool(jnp.allclose(out_nd, ref_nd, atol=1e-3, rtol=1e-3))

    # ---------------- OffToOn ----------------
    lon_pts = jax.random.uniform(ks[6], (B, P), jnp.float32, -1.0, 1.0)
    lat_pts = jax.random.uniform(ks[7], (B, P), jnp.float32, -1.0, 1.0)
    miss = jax.random.bernoulli(ks[8], 0.2, (B, P))
    lon_pts = jnp.where(miss, jnp.nan, lon_pts)
    lat_pts = jnp.where(miss, jnp.nan, lat_pts)
    wt_off = jax.random.normal(ks[9], (B, C, P), jnp.float32)
    wt_off = jnp.where(miss[:, None, :], jnp.nan, wt_off)
    x_in = [lon_pts, lat_pts]
    x_out = [grid_coords(X, ks[10]), grid_coords(Y, ks[11])]
    out = jax.block_until_ready(
        conv_deep_set_forward(x_in, wt_off, x_out, init_ls, 'OffToOn'))
    ref = ref_forward(x_in, wt_off, x_out, init_ls, 'OffToOn')
    results_ok &= bool(jnp.allclose(out, ref, atol=1e-3, rtol=1e-3))

    # ---------------- OnToOff ----------------
    x_in = [grid_coords(W, ks[12], 0.01), grid_coords(H, ks[13], 0.01)]
    lon_o = jax.random.uniform(ks[14], (B, P), jnp.float32, -1.0, 1.0)
    lat_o = jax.random.uniform(ks[15], (B, P), jnp.float32, -1.0, 1.0)
    miss_o = jax.random.bernoulli(ks[8], 0.2, (B, P))
    lon_o = jnp.where(miss_o, jnp.nan, lon_o)
    lat_o = jnp.where(miss_o, jnp.nan, lat_o)
    wt_on = jax.random.normal(ks[4], (B, C, W, H), jnp.float32)
    wt_on = jnp.where(jax.random.bernoulli(ks[5], 0.1, (B, C, W, H)),
                      jnp.nan, wt_on)
    x_out = [lon_o, lat_o]
    out = jax.block_until_ready(
        conv_deep_set_forward(x_in, wt_on, x_out, init_ls, 'OnToOff'))
    ref = ref_forward(x_in, wt_on, x_out, init_ls, 'OnToOff')
    results_ok &= bool(jnp.allclose(out, ref, atol=1e-3, rtol=1e-3))

    assert results_ok, "Pallas convDeepSet output mismatch vs JAX reference"
    print("KERNEL_OK")
</pallas_src>

<mosaic_0001>
module attributes {stable_mosaic.version = 11 : i64} {
  func.func @_on_to_on_kernel(%arg0: i32, %arg1: memref<1x1xf32, #tpu.memory_space<vmem>>, %arg2: memref<1x16x1xf32, #tpu.memory_space<vmem>>, %arg3: memref<1x16x1xf32, #tpu.memory_space<vmem>>, %arg4: memref<1x1x16xf32, #tpu.memory_space<vmem>>, %arg5: memref<1x1x16xf32, #tpu.memory_space<vmem>>, %arg6: memref<1x16x80xf32, #tpu.memory_space<vmem>>, %arg7: memref<1x80x16xf32, #tpu.memory_space<vmem>>) attributes {dimension_semantics = [#tpu.dimension_semantics<parallel>], iteration_bounds = array<i64: 2>, scalar_prefetch = 0 : i64, scratch_operands = 0 : i64, tpu.core_type = #tpu.core_type<tc>, window_params = [{pipeline_mode = #tpu.pipeline_mode<synchronous>, transform_indices = @transform_0, window_bounds = array<i64: 1, 1>}, {transform_indices = @transform_1, window_bounds = array<i64: 1, 16, 1>}, {transform_indices = @transform_2, window_bounds = array<i64: 1, 16, 1>}, {transform_indices = @transform_3, window_bounds = array<i64: 1, 1, 16>}, {transform_indices = @transform_4, window_bounds = array<i64: 1, 1, 16>}, {transform_indices = @transform_5, window_bounds = array<i64: 1, 16, 80>}, {transform_indices = @transform_6, window_bounds = array<i64: 1, 80, 16>}]} {
    %c0 = arith.constant 0 : index
    %c0_0 = arith.constant 0 : index
    %0 = vector.load %arg1[%c0, %c0_0] : memref<1x1xf32, #tpu.memory_space<vmem>>, vector<1x1xf32>
    %c0_1 = arith.constant 0 : index
    %c0_2 = arith.constant 0 : index
    %c0_3 = arith.constant 0 : index
    %1 = vector.load %arg2[%c0_1, %c0_2, %c0_3] : memref<1x16x1xf32, #tpu.memory_space<vmem>>, vector<1x16x1xf32>
    %2 = vector.shape_cast %1 : vector<1x16x1xf32> to vector<16x1xf32>
    %c0_4 = arith.constant 0 : index
    %c0_5 = arith.constant 0 : index
    %c0_6 = arith.constant 0 : index
    %3 = vector.load %arg4[%c0_4, %c0_5, %c0_6] : memref<1x1x16xf32, #tpu.memory_space<vmem>>, vector<1x1x16xf32>
    %4 = vector.shape_cast %3 : vector<1x1x16xf32> to vector<1x16xf32>
    %5 = arith.mulf %2, %2 : vector<16x1xf32>
    %6 = arith.mulf %4, %4 : vector<1x16xf32>
    %7 = vector.broadcast %5 : vector<16x1xf32> to vector<16x16xf32>
    %8 = vector.broadcast %6 : vector<1x16xf32> to vector<16x16xf32>
    %9 = arith.addf %7, %8 : vector<16x16xf32>
    %10 = vector.broadcast %2 : vector<16x1xf32> to vector<16x16xf32>
    %11 = vector.broadcast %4 : vector<1x16xf32> to vector<16x16xf32>
    %12 = arith.mulf %10, %11 : vector<16x16xf32>
    %cst = arith.constant 2.000000e+00 : f32
    %13 = vector.broadcast %cst : f32 to vector<16x16xf32>
    %14 = arith.mulf %13, %12 : vector<16x16xf32>
    %15 = arith.subf %9, %14 : vector<16x16xf32>
    %16 = vector.broadcast %0 : vector<1x1xf32> to vector<16x16xf32>
    %17 = arith.mulf %15, %16 : vector<16x16xf32>
    %18 = math.exp %17 : vector<16x16xf32>
    %c0_7 = arith.constant 0 : index
    %c0_8 = arith.constant 0 : index
    %c0_9 = arith.constant 0 : index
    %19 = vector.load %arg3[%c0_7, %c0_8, %c0_9] : memref<1x16x1xf32, #tpu.memory_space<vmem>>, vector<1x16x1xf32>
    %20 = vector.shape_cast %19 : vector<1x16x1xf32> to vector<16x1xf32>
    %c0_10 = arith.constant 0 : index
    %c0_11 = arith.constant 0 : index
    %c0_12 = arith.constant 0 : index
    %21 = vector.load %arg5[%c0_10, %c0_11, %c0_12] : memref<1x1x16xf32, #tpu.memory_space<vmem>>, vector<1x1x16xf32>
    %22 = vector.shape_cast %21 : vector<1x1x16xf32> to vector<1x16xf32>
    %23 = arith.mulf %20, %20 : vector<16x1xf32>
    %24 = arith.mulf %22, %22 : vector<1x16xf32>
    %25 = vector.broadcast %23 : vector<16x1xf32> to vector<16x16xf32>
    %26 = vector.broadcast %24 : vector<1x16xf32> to vector<16x16xf32>
    %27 = arith.addf %25, %26 : vector<16x16xf32>
    %28 = vector.broadcast %20 : vector<16x1xf32> to vector<16x16xf32>
    %29 = vector.broadcast %22 : vector<1x16xf32> to vector<16x16xf32>
    %30 = arith.mulf %28, %29 : vector<16x16xf32>
    %cst_13 = arith.constant 2.000000e+00 : f32
    %31 = vector.broadcast %cst_13 : f32 to vector<16x16xf32>
    %32 = arith.mulf %31, %30 : vector<16x16xf32>
    %33 = arith.subf %27, %32 : vector<16x16xf32>
    %34 = vector.broadcast %0 : vector<1x1xf32> to vector<16x16xf32>
    %35 = arith.mulf %33, %34 : vector<16x16xf32>
    %36 = math.exp %35 : vector<16x16xf32>
    %c0_14 = arith.constant 0 : index
    %c0_15 = arith.constant 0 : index
    %c0_16 = arith.constant 0 : index
    %37 = vector.load %arg6[%c0_14, %c0_15, %c0_16] : memref<1x16x80xf32, #tpu.memory_space<vmem>>, vector<1x16x80xf32>
    %38 = vector.shape_cast %37 : vector<1x16x80xf32> to vector<16x80xf32>
    %cst_17 = arith.constant dense<0.000000e+00> : vector<80x16xf32>
    %39 = tpu.matmul %38, %18, %cst_17 {dimension_numbers = #tpu.dot_dimension_numbers<[0], [0], [1], [1], [0, 1, 1, 1], [], []>} : vector<16x80xf32>, vector<16x16xf32>, vector<80x16xf32> -> vector<80x16xf32>
    %40 = vector.shape_cast %39 : vector<80x16xf32> to vector<5x16x16xf32>
    %41 = tpu.transpose %40, [0, 2, 1] : vector<5x16x16xf32> -> vector<5x16x16xf32>
    %42 = vector.shape_cast %41 : vector<5x16x16xf32> to vector<80x16xf32>
    %cst_18 = arith.constant dense<0.000000e+00> : vector<80x16xf32>
    %43 = tpu.matmul %42, %36, %cst_18 {dimension_numbers = #tpu.dot_dimension_numbers<[1], [0], [0], [1], [0, 0, 1, 1], [], []>} : vector<80x16xf32>, vector<16x16xf32>, vector<80x16xf32> -> vector<80x16xf32>
    %44 = vector.extract_strided_slice %43 {offsets = [0, 0], sizes = [16, 16], strides = [1, 1]} : vector<80x16xf32> to vector<16x16xf32>
    %cst_19 = arith.constant 9.99999997E-7 : f32
    %cst_20 = arith.constant 1.000000e+05 : f32
    %45 = vector.broadcast %cst_19 : f32 to vector<16x16xf32>
    %46 = arith.maximumf %45, %44 : vector<16x16xf32>
    %47 = vector.broadcast %cst_20 : f32 to vector<16x16xf32>
    %48 = arith.minimumf %47, %46 : vector<16x16xf32>
    %49 = tpu.reciprocal %48 : vector<16x16xf32> -> vector<16x16xf32>
    %50 = vector.extract_strided_slice %43 {offsets = [16, 0], sizes = [64, 16], strides = [1, 1]} : vector<80x16xf32> to vector<64x16xf32>
    %51 = vector.shape_cast %50 : vector<64x16xf32> to vector<4x16x16xf32>
    %52 = vector.shape_cast %49 : vector<16x16xf32> to vector<1x16x16xf32>
    %53 = vector.broadcast %52 : vector<1x16x16xf32> to vector<4x16x16xf32>
    %54 = arith.mulf %51, %53 : vector<4x16x16xf32>
    %55 = vector.shape_cast %54 : vector<4x16x16xf32> to vector<64x16xf32>
    %c0_21 = arith.constant 0 : index
    %c0_22 = arith.constant 0 : index
    %c0_23 = arith.constant 0 : index
    %56 = vector.load %arg7[%c0_21, %c0_22, %c0_23] : memref<1x80x16xf32, #tpu.memory_space<vmem>>, vector<1x16x16xf32>
    %57 = vector.shape_cast %56 : vector<1x16x16xf32> to vector<16x16xf32>
    %58 = vector.shape_cast %44 : vector<16x16xf32> to vector<1x16x16xf32>
    tpu.vector_store %arg7[%c0_21, %c0_22, %c0_23], %58 {strides = array<i32>} : memref<1x80x16xf32, #tpu.memory_space<vmem>>, vector<1x16x16xf32>,
    %c0_24 = arith.constant 0 : index
    %c16 = arith.constant 16 : index
    %c0_25 = arith.constant 0 : index
    %59 = vector.load %arg7[%c0_24, %c16, %c0_25] : memref<1x80x16xf32, #tpu.memory_space<vmem>>, vector<1x64x16xf32>
    %60 = vector.shape_cast %59 : vector<1x64x16xf32> to vector<64x16xf32>
    %61 = vector.shape_cast %55 : vector<64x16xf32> to vector<1x64x16xf32>
    tpu.vector_store %arg7[%c0_24, %c16, %c0_25], %61 {strides = array<i32>} : memref<1x80x16xf32, #tpu.memory_space<vmem>>, vector<1x64x16xf32>,
    return
  }
  func.func @transform_0(%arg0: i32) -> (i32, i32) {
    %c0_i32 = arith.constant 0 : i32
    %c0_i32_0 = arith.constant 0 : i32
    %c0_i32_1 = arith.constant 0 : i32
    return %c0_i32, %c0_i32_0 : i32, i32
  }
  func.func @transform_1(%arg0: i32) -> (i32, i32, i32) {
    %c0_i32 = arith.constant 0 : i32
    %c0_i32_0 = arith.constant 0 : i32
    %c0_i32_1 = arith.constant 0 : i32
    return %arg0, %c0_i32, %c0_i32_0 : i32, i32, i32
  }
  func.func @transform_2(%arg0: i32) -> (i32, i32, i32) {
    %c0_i32 = arith.constant 0 : i32
    %c0_i32_0 = arith.constant 0 : i32
    %c0_i32_1 = arith.constant 0 : i32
    return %arg0, %c0_i32, %c0_i32_0 : i32, i32, i32
  }
  func.func @transform_3(%arg0: i32) -> (i32, i32, i32) {
    %c0_i32 = arith.constant 0 : i32
    %c0_i32_0 = arith.constant 0 : i32
    %c0_i32_1 = arith.constant 0 : i32
    return %arg0, %c0_i32, %c0_i32_0 : i32, i32, i32
  }
  func.func @transform_4(%arg0: i32) -> (i32, i32, i32) {
    %c0_i32 = arith.constant 0 : i32
    %c0_i32_0 = arith.constant 0 : i32
    %c0_i32_1 = arith.constant 0 : i32
    return %arg0, %c0_i32, %c0_i32_0 : i32, i32, i32
  }
  func.func @transform_5(%arg0: i32) -> (i32, i32, i32) {
    %c0_i32 = arith.constant 0 : i32
    %c0_i32_0 = arith.constant 0 : i32
    %c0_i32_1 = arith.constant 0 : i32
    return %arg0, %c0_i32, %c0_i32_0 : i32, i32, i32
  }
  func.func @transform_6(%arg0: i32) -> (i32, i32, i32) {
    %c0_i32 = arith.constant 0 : i32
    %c0_i32_0 = arith.constant 0 : i32
    %c0_i32_1 = arith.constant 0 : i32
    return %arg0, %c0_i32, %c0_i32_0 : i32, i32, i32
  }
}

</mosaic_0001>

<bundles_post_ra>
// kernel: tpu_custom_call.1
= control target key start
LH: loop header
LB: loop body
LE: loop exit
PB: predicated region body
PF: predicated region fallthrough
CT: control target
= control target key end

     0   :  { %s1222_s23 = smov 0   ;;  %s1299_s0 = inlined_call_operand.<no memory space> [shape: f32[1,1], index: 0, kind: input, shape index: {}]   ;;  %s1300_s1 = inlined_call_operand.vmem [shape: f32[2,16,1], index: 1, kind: input, shape index: {}]   ;;  %s1301_s2 = inlined_call_operand.vmem [shape: f32[2,16,1], index: 2, kind: input, shape index: {}]   ;;  %s1302_s3 = inlined_call_operand.vmem [shape: f32[2,1,16], index: 3, kind: input, shape index: {}]   ;;  %s1303_s4 = inlined_call_operand.vmem [shape: f32[2,1,16], index: 4, kind: input, shape index: {}]   ;;  %s1304_s5 = inlined_call_operand.vmem [shape: f32[2,16,80], index: 5, kind: input, shape index: {}]   ;;  %s1305_s6 = inlined_call_operand.vmem [shape: f32[2,80,16], index: 6, kind: output, shape index: {}]  }
   0x1   :  { %v11_v0 = vstv %s1299_s0 }
   0x2   :  { %12 = vst [vmem:[#allocation2] sm:$0x1] %v11_v0 }
   0x3 LB: > { %s1042_s24 = sadd.s32 4294967295, %s1181_s23   ;;  %p1046_p0 = scmp.ge.s32.totalorder %s1181_s23, 1  ;;  %s1181_s23 = sphi %s1222_s23, %s18_s23  }
   0x4   : > { %p250_p1 = scmp.lt.s32.totalorder %s1181_s23, 3 }
   0x6   : > { %p251_p2 = pnand %p1046_p0, %p250_p1 }
   0x7   : > { %p296_p3 = scmp.lt.s32.totalorder (!%p251_p2), %s1042_s24, 1  ;;  %v1183_v1 = vmov (!%p251_p2), 0   ;;  %v340_v13 = vlaneseq (!%p251_p2)  ;;  %vm470_vm0 = vcmask (!%p251_p2), 130048  }
   0x8   : > { %254 = sbr.rel (%p251_p2) target bundleno = 793 (0x319), region = 44  ;;  %1161 = vset.pattern.permute.xlu0 (!%p251_p2), %v1183_v1  ;;  %1162 = vset.pattern.permute.xlu1 (!%p251_p2), %v1183_v1 }
   0x9   : > { %v1054_v6 = vld [vmem:[#allocation2] ss:$0 sm:$0xff] (!%p251_p2)  ;;  %v341_v14 = vshrl.u32 (!%p251_p2), %v340_v13, 7 }
   0xb   : > { %v342_v16 = vsub.s32 (!%p251_p2), 0, %v341_v14 }
   0xf   : > { %s1307_s24 = smov (!%p296_p3, %s1042_s24), 1 }
  0x10   : > { %s1077_s0 = sshll.u32 %s1307_s24, 4  ;;  %s308_s12 = scalar_lea.vmem %s1302_s3, %s1307_s24 }
  0x11   : > { %s300_s27 = scalar_lea.vmem %s1300_s1, %s1077_s0  ;;  %s305_s30 = scalar_lea.vmem %s1301_s2, %s1077_s0  ;;  %v325_v15 = vld [vmem:[%s308_s12] sm:$0x1] }
  0x12   : > { %v323_v2 = vld [vmem:[%s300_s27] sm:$0xff]  ;;  %v324_v3 = vld [vmem:[%s300_s27 + $0x8] sm:$0xff]  ;;  %s316_s9 = scalar_lea.vmem %s1304_s5, %s1077_s0  ;;  %v328_v17 = vmul.f32 %v325_v15, %v325_v15  ;;  %v361_v18 = vrot.slane %v325_v15, %v342_v16  ;;  %s311_s15 = scalar_lea.vmem %s1303_s4, %s1307_s24 }
  0x13   : > { %349 = vperm.xlu0 %1161, %v323_v2   ;;  %v326_v4 = vmul.f32 %v323_v2, %v323_v2  ;;  %v327_v5 = vmul.f32 %v324_v3, %v324_v3  ;;  %v384_v7 = vld [vmem:[%s305_s30] sm:$0xff]  ;;  %v385_v8 = vld [vmem:[%s305_s30 + $0x8] sm:$0xff]  ;;  %s1150_s16 = smul.u32 80, %s1307_s24 }
  0x14   : > { %v387_v9 = vmul.f32 %v384_v7, %v384_v7  ;;  %v388_v10 = vmul.f32 %v385_v8, %v385_v8  ;;  %v436_v11 = vld [vmem:[%s316_s9] sm:$0xff]  ;;  %v437_v12 = vld [vmem:[%s316_s9 + $0x8] sm:$0xff]  ;;  %v343_v19 = vrot.slane %v328_v17, %v342_v16 }
  0x15   : > { %331 = vperm.xlu1 %1162, %v326_v4   ;;  %v386_v32 = vld [vmem:[%s311_s15] sm:$0x1]  ;;  %s1274_s19 = scalar_lea.vmem %s1305_s6, %s1150_s16 }
  0x16   : > { %v422_v37 = vrot.slane %v386_v32, %v342_v16  ;;  %v389_v40 = vmul.f32 %v386_v32, %v386_v32 }
  0x17   : > { %354 = vperm.xlu0 %1161, %v324_v3  }
  0x18   : > { %v404_v43 = vrot.slane %v389_v40, %v342_v16 }
  0x19   : > { %336 = vperm.xlu1 %1162, %v327_v5  }
  0x1b   : > { %375 = vperm.xlu0 %1161, %v1054_v6  }
  0x1f   : > { %410 = vperm.xlu0 %1161, %v384_v7  }
  0x23   : > { %415 = vperm.xlu0 %1161, %v385_v8  }
  0x27   : > { %392 = vperm.xlu0 %1161, %v387_v9  }
  0x2b   : > { %397 = vperm.xlu0 %1161, %v388_v10  }
  0x42   : > { %438 = vxpose.xlu1.b32.start [1/2] (short) (narrow) %v436_v11, 80 }
  0x46   : > { %439 = vxpose.xlu1.b32.end [2/2] (short) (narrow) %v437_v12, 80 }
  0x92   : > { %v350_v20 = vpop.permute.xlu0 %349 }
  0x93   : > { %v363_v21 = vmul.f32 %v361_v18, %v350_v20 }
  0x94   : > { %v332_v22 = vpop.permute.xlu1 %331 }
  0x95   : > { %v365_v23 = vmul.f32 2.0, %v363_v21  ;;  %v345_v24 = vadd.f32 %v343_v19, %v332_v22 }
  0x96   : > { %v355_v25 = vpop.permute.xlu0 %354 }
  0x97   : > { %v364_v26 = vmul.f32 %v361_v18, %v355_v25  ;;  %v367_v28 = vsub.f32 %v345_v24, %v365_v23 }
  0x98   : > { %v337_v27 = vpop.permute.xlu1 %336 }
  0x99   : > { %v366_v29 = vmul.f32 2.0, %v364_v26  ;;  %v346_v30 = vadd.f32 %v343_v19, %v337_v27 }
  0x9a   : > { %v376_v31 = vpop.permute.xlu0 %375 }
  0x9b   : > { %v368_v33 = vsub.f32 %v346_v30, %v366_v29  ;;  %v378_v34 = vmul.f32 %v376_v31, %v367_v28 }
  0x9d   : > { %v379_v35 = vmul.f32 %v376_v31, %v368_v33  ;;  %v380_v36 = vmul.f32 1.442695, %v378_v34 }
  0x9e   : > { %v411_v38 = vpop.permute.xlu0 %410 }
  0x9f   : > { %v382_v39 = vmul.f32 1.442695, %v379_v35  ;;  %1163 = vpow2.f32 %v380_v36  ;;  %v424_v41 = vmul.f32 %v422_v37, %v411_v38 }
  0xa1   : > { %1165 = vpow2.f32 %v382_v39  ;;  %v426_v44 = vmul.f32 2.0, %v424_v41 }
  0xa2   : > { %v416_v42 = vpop.permute.xlu0 %415 }
  0xa3   : > { %v425_v45 = vmul.f32 %v422_v37, %v416_v42 }
  0xa5   : > { %v427_v48 = vmul.f32 2.0, %v425_v45 }
  0xa6   : > { %v393_v46 = vpop.permute.xlu0 %392 }
  0xa7   : > { %v406_v47 = vadd.f32 %v404_v43, %v393_v46 }
  0xa9   : > { %v428_v49 = vsub.f32 %v406_v47, %v426_v44  ;;  %v1164_v50 = vpop.eup %1163 }
  0xaa   : > { %v398_v51 = vpop.permute.xlu0 %397 }
  0xab   : > { %v1166_v52 = vpop.eup %1165  ;;  %v430_v53 = vmul.f32 %v428_v49, %v376_v31  ;;  %v407_v54 = vadd.f32 %v404_v43, %v398_v51 }
  0xac   : > { %v1142_v55 = vpack.c.bf16 %v1166_v52, %v1164_v50 }
  0xad   : > { %v432_v56 = vmul.f32 1.442695, %v430_v53  ;;  %v429_v57 = vsub.f32 %v407_v54, %v427_v48 }
  0xae   : > { %1143 = vmatprep.subr.bf16.mxu0 %v1142_v55 }
  0xaf   : > { %v431_v58 = vmul.f32 %v429_v57, %v376_v31  ;;  %1145 = vmatpush3.bf16.msra.mxu0 %v1142_v55  ;;  %1167 = vpow2.f32 %v432_v56 }
  0xb1   : > { %v434_v59 = vmul.f32 1.442695, %v431_v58 }
  0xb3   : > { %1169 = vpow2.f32 %v434_v59 }
  0xb9   : > { %v1168_v60 = vpop.eup %1167 }
  0xbd   : > { %v1170_v61 = vpop.eup %1169 }
  0xbe   : > { %v1146_v62 = vpack.c.bf16 %v1170_v61, %v1168_v60 }
  0xc0   : > { %1147 = vmatprep.subr.bf16.mxu1 %v1146_v62 }
  0xc1   : > { %1149 = vmatpush3.bf16.msra.mxu1 %v1146_v62 }
  0xc2   : > { %v454_v63 = vpop.trf.xlu1 }
  0xc3   : > { %1108 = vmatprep.mubr.msk.f32.mxu0 %vm470_vm0, %v454_v63 }
  0xc6   : > { %v455_v0 = vpop.trf.xlu1 }
  0xc7   : > { %1109 = vmatmul.mubr.msk.f32.vlgmr.msra.gmra.mrb[0].mxu0 %vm470_vm0, %v455_v0 }
  0xca   : > { %v456_v1 = vpop.trf.xlu1 }
  0xcb   : > { %1111 = vmatprep.mubr.msk.f32.mxu0 %vm470_vm0, %v456_v1 }
  0xce   : > { %v457_v2 = vpop.trf.xlu1 }
  0xcf   : > { %1112 = vmatmul.mubr.msk.f32.gmra.mrb[2].mxu0 %vm470_vm0, %v457_v2 }
  0xd2   : > { %v458_v3 = vpop.trf.xlu1 }
  0xd3   : > { %1114 = vmatprep.mubr.msk.f32.mxu0 %vm470_vm0, %v458_v3 }
  0xd6   : > { %v459_v4 = vpop.trf.xlu1 }
  0xd7   : > { %1115 = vmatmul.mubr.msk.f32.gmra.mrb[4].mxu0 %vm470_vm0, %v459_v4 }
  0xda   : > { %v460_v5 = vpop.trf.xlu1 }
  0xdb   : > { %1117 = vmatprep.mubr.msk.f32.mxu0 %vm470_vm0, %v460_v5 }
  0xde   : > { %v461_v6 = vpop.trf.xlu1 }
  0xdf   : > { %1118 = vmatmul.mubr.msk.f32.gmra.mrb[6].mxu0 %vm470_vm0, %v461_v6 }
  0xe2   : > { %v462_v7 = vpop.trf.xlu1 }
  0xe3   : > { %1120 = vmatprep.mubr.msk.f32.mxu0 %vm470_vm0, %v462_v7 }
  0xe6   : > { %v463_v8 = vpop.trf.xlu1 }
  0xe7   : > { %1121 = vmatmul.mubr.msk.f32.gmra.mrb[8].mxu0 %vm470_vm0, %v463_v8 }
 0x19a   : > { %v1110_v9 = vpop.f32.mrb[0].mxu0 }
 0x19b   : > { %v567_v10 = vpop.f32.mrb[1].mxu0 }
 0x19c   : > { %616 = vxpose.xlu0.b32.start [1/2] (short) (narrow) %v567_v10, 16 }
 0x1a0   : > { %617 = vxpose.xlu0.b32.end [2/2] (short) (narrow) %v1110_v9, 16 }
 0x1a2   : > { %v1113_v11 = vpop.f32.mrb[2].mxu0 }
 0x1a3   : > { %v577_v12 = vpop.f32.mrb[3].mxu0 }
 0x1a4   : > { %648 = vxpose.xlu1.b32.start [1/2] (short) (narrow) %v577_v12, 16 }
 0x1a8   : > { %649 = vxpose.xlu1.b32.end [2/2] (short) (narrow) %v1113_v11, 16 }
 0x1aa   : > { %v1116_v13 = vpop.f32.mrb[4].mxu0 }
 0x1ab   : > { %v587_v14 = vpop.f32.mrb[5].mxu0 }
 0x1ac   : > { %680 = vxpose.xlu0.b32.start [1/2] (short) (narrow) %v587_v14, 16 }
 0x1b0   : > { %681 = vxpose.xlu0.b32.end [2/2] (short) (narrow) %v1116_v13, 16 }
 0x1b2   : > { %v1119_v15 = vpop.f32.mrb[6].mxu0 }
 0x1b3   : > { %v597_v16 = vpop.f32.mrb[7].mxu0 }
 0x1b4   : > { %712 = vxpose.xlu0.b32.start [1/2] (short) (narrow) %v597_v16, 16 }
 0x1b8   : > { %713 = vxpose.xlu0.b32.end [2/2] (short) (narrow) %v1119_v15, 16 }
 0x1ba   : > { %v1122_v17 = vpop.f32.mrb[8].mxu0 }
 0x1bb   : > { %v607_v18 = vpop.f32.mrb[9].mxu0 }
 0x1bc   : > { %744 = vxpose.xlu0.b32.start [1/2] (short) (narrow) %v607_v18, 16 }
 0x1c0   : > { %745 = vxpose.xlu0.b32.end [2/2] (short) (narrow) %v1122_v17, 16 }
 0x21c   : > { %v632_v19 = vpop.trf.xlu0 }
 0x21d   : > { %1127 = vmatprep.mubr.msk.f32.mxu1 %vm470_vm0, %v632_v19 }
 0x220   : > { %v633_v20 = vpop.trf.xlu0 }
 0x221   : > { %1128 = vmatmul.mubr.msk.f32.vlgmr.msra.gmra.mrb[0].mxu1 %vm470_vm0, %v633_v20 }
 0x224   : > { %v664_v21 = vpop.trf.xlu1 }
 0x225   : > { %1130 = vmatprep.mubr.msk.f32.mxu1 %vm470_vm0, %v664_v21 }
 0x228   : > { %v665_v22 = vpop.trf.xlu1 }
 0x229   : > { %1131 = vmatmul.mubr.msk.f32.gmra.mrb[2].mxu1 %vm470_vm0, %v665_v22 }
 0x22c   : > { %v696_v23 = vpop.trf.xlu0 }
 0x22d   : > { %1133 = vmatprep.mubr.msk.f32.mxu1 %vm470_vm0, %v696_v23 }
 0x230   : > { %v697_v24 = vpop.trf.xlu0 }
 0x231   : > { %1134 = vmatmul.mubr.msk.f32.gmra.mrb[4].mxu1 %vm470_vm0, %v697_v24 }
 0x234   : > { %v728_v25 = vpop.trf.xlu0 }
 0x235   : > { %1136 = vmatprep.mubr.msk.f32.mxu1 %vm470_vm0, %v728_v25 }
 0x238   : > { %v729_v26 = vpop.trf.xlu0 }
 0x239   : > { %1137 = vmatmul.mubr.msk.f32.gmra.mrb[6].mxu1 %vm470_vm0, %v729_v26 }
 0x23c   : > { %v760_v27 = vpop.trf.xlu0 }
 0x23d   : > { %1139 = vmatprep.mubr.msk.f32.mxu1 %vm470_vm0, %v760_v27 }
 0x240   : > { %v761_v28 = vpop.trf.xlu0 }
 0x241   : > { %1140 = vmatmul.mubr.msk.f32.gmra.mrb[8].mxu1 %vm470_vm0, %v761_v28 }
 0x2f4   : > { %v1129_v29 = vpop.f32.mrb[0].mxu1 }
 0x2f5   : > { %v922_v30 = vmax.f32 %v1129_v29, 1e-06  ;;  %936 = vst.msk [vmem:[%s1274_s19 + $0x8] sm:$0xff] %vm470_vm0, %v1129_v29  ;;  %v872_v31 = vpop.f32.mrb[1].mxu1 }
 0x2f6   : > { %v921_v32 = vmax.f32 %v872_v31, 1e-06  ;;  %935 = vst.msk [vmem:[%s1274_s19] sm:$0xff] %vm470_vm0, %v872_v31 }
 0x2f7   : > { %v924_v33 = vmin.f32 %v922_v30, 100000.0 }
 0x2f8   : > { %v923_v34 = vmin.f32 %v921_v32, 100000.0 }
 0x2f9   : > { %1171 = vrcp.f32 %v924_v33 }
 0x2fa   : > { %1173 = vrcp.f32 %v923_v34 }
 0x2fc   : > { %v1132_v35 = vpop.f32.mrb[2].mxu1 }
 0x2fd   : > { %v882_v36 = vpop.f32.mrb[3].mxu1 }
 0x303   : > { %v1172_v37 = vpop.eup %1171 }
 0x304   : > { %v1174_v38 = vpop.eup %1173  ;;  %v928_v39 = vmul.f32 %v1172_v37, %v1132_v35  ;;  %v1135_v40 = vpop.f32.mrb[4].mxu1 }
 0x305   : > { %v927_v41 = vmul.f32 %v1174_v38, %v882_v36  ;;  %v930_v42 = vmul.f32 %v1172_v37, %v1135_v40  ;;  %v892_v43 = vpop.f32.mrb[5].mxu1 }
 0x306   : > { %938 = vst.msk [vmem:[%s1274_s19 + $0x18] sm:$0xff] %vm470_vm0, %v928_v39  ;;  %v929_v44 = vmul.f32 %v1174_v38, %v892_v43 }
 0x307   : > { %937 = vst.msk [vmem:[%s1274_s19 + $0x10] sm:$0xff] %vm470_vm0, %v927_v41  ;;  %940 = vst.msk [vmem:[%s1274_s19 + $0x28] sm:$0xff] %vm470_vm0, %v930_v42 }
 0x308   : > { %939 = vst.msk [vmem:[%s1274_s19 + $0x20] sm:$0xff] %vm470_vm0, %v929_v44 }
 0x30c   : > { %v1138_v45 = vpop.f32.mrb[6].mxu1 }
 0x30d   : > { %v932_v46 = vmul.f32 %v1172_v37, %v1138_v45  ;;  %v902_v47 = vpop.f32.mrb[7].mxu1 }
 0x30e   : > { %v931_v48 = vmul.f32 %v1174_v38, %v902_v47 }
 0x30f   : > { %942 = vst.msk [vmem:[%s1274_s19 + $0x38] sm:$0xff] %vm470_vm0, %v932_v46 }
 0x310   : > { %941 = vst.msk [vmem:[%s1274_s19 + $0x30] sm:$0xff] %vm470_vm0, %v931_v48 }
 0x314   : > { %v1141_v49 = vpop.f32.mrb[8].mxu1 }
 0x315   : > { %v934_v50 = vmul.f32 %v1172_v37, %v1141_v49  ;;  %v912_v51 = vpop.f32.mrb[9].mxu1 }
 0x316   : > { %v933_v52 = vmul.f32 %v1174_v38, %v912_v51 }
 0x317   : > { %944 = vst.msk [vmem:[%s1274_s19 + $0x48] sm:$0xff] %vm470_vm0, %v934_v50 }
 0x318   : > { %943 = vst.msk [vmem:[%s1274_s19 + $0x40] sm:$0xff] %vm470_vm0, %v933_v52 }
 0x319 PF: > { %s18_s23 = sadd.s32 1, %s1181_s23  }
 0x31a   : > { %p15_p4 = scmp.ge.s32.totalorder %s18_s23, 4  }
 0x31c   :  { %17 = sbr.rel (!%p15_p4) target bundleno = 3 (0x3), region = 86 }

</bundles_post_ra>
